<compile_context>
chip_gen: v7x
topology: tpu7x:2x2x1
jax: 0.10.0
libtpu: 0.0.40
codegen_flags: <defaults>
</compile_context>

<pallas_src>
import functools

import jax
import jax.numpy as jnp
from jax.experimental import pallas as pl
from jax.experimental.pallas import tpu as pltpu

_BIG = 1e30  # "infinite" distance for padded rows / columns


def _round_up(x, m):
    return (x + m - 1) // m * m


def _chamfer_kernel(a_ref, b_ref, out_gt_ref, out_col_ref,
                    rowmin_ref, acc_ref, *, tn, n_real, inv_n, mask_rows):
    i = pl.program_id(1)            # gt (N) tile index
    j = pl.program_id(2)            # coord (M) tile index
    ni = pl.num_programs(1)
    nj = pl.num_programs(2)

    # --- per-batch / per-N-tile initialization -----------------------------
    @pl.when(jnp.logical_and(i == 0, j == 0))
    def _():
        acc_ref[...] = jnp.zeros_like(acc_ref)

    @pl.when(j == 0)
    def _():
        rowmin_ref[...] = jnp.full((tn, 1), jnp.inf, dtype=jnp.float32)

    # --- MXU: (TN, K) @ (K, TM) pairwise squared distances ------------------
    dis = jnp.dot(a_ref[...], b_ref[...], preferred_element_type=jnp.float32)

    # Running nearest-coord minimum for this gt tile (resident across j).
    rowmin_ref[...] = jnp.minimum(rowmin_ref[...],
                                  jnp.min(dis, axis=1, keepdims=True))

    # Nearest-gt minimum over this tile's gt rows; lane-dense (1, TM) output,
    # min-reduced over the ni gt tiles in the wrapper.
    out_col_ref[...] = jnp.min(dis, axis=0, keepdims=True)

    # --- finalize this gt tile once all coord tiles have been visited -------
    @pl.when(j == nj - 1)
    def _():
        rm = rowmin_ref[...]
        if mask_rows:  # exclude padded gt rows from the sum
            rid = i * tn + jax.lax.broadcasted_iota(jnp.int32, (tn, 1), 0)
            rm = jnp.where(rid < n_real, rm, 0.0)
        acc_ref[...] = acc_ref[...] + jnp.sum(rm) * inv_n

    # --- per-batch partial: sum_n min_m dis / N ------------------------------
    @pl.when(jnp.logical_and(i == ni - 1, j == nj - 1))
    def _():
        out_gt_ref[...] = jnp.broadcast_to(acc_ref[...], out_gt_ref.shape)


def chamfer_lossv2(coord, gt, weight=1.0, threshold=1.2, *,
                   tn_cap=256, tm_cap=512):
    """Pallas implementation of chamfer_lossv2.forward.

    coord: (B, M, C) float array, gt: (B, N, C) float array (channels-last;
    the PyTorch module transposes to channels-first internally — the math is
    identical).  Returns a scalar loss.
    """
    del threshold  # TODO(synk): threshold is stored by the module but unused in forward.
    B, M, C = coord.shape
    Bg, N, Cg = gt.shape
    assert B == Bg and C == Cg, "batch / coordinate dims must match"

    coord32 = coord.astype(jnp.float32)   # keep distance math in f32
    gt32 = gt.astype(jnp.float32)

    # ---- tiling / padding ---------------------------------------------------
    tn = tn_cap if N >= tn_cap else _round_up(N, 8)
    n_pad = _round_up(N, tn)
    tm = tm_cap if M >= tm_cap else _round_up(M, 128)
    m_pad = _round_up(M, tm)
    k = _round_up(C + 2, 8)
    ni, nj = n_pad // tn, m_pad // tm

    # ---- augmented MXU operands (wrapper-side layout plumbing is free) ------
    gt_sq = jnp.sum(gt32 * gt32, axis=-1, keepdims=True)        # (B, N, 1)
    co_sq = jnp.sum(coord32 * coord32, axis=-1, keepdims=True)  # (B, M, 1)

    # A[b, n, :] = [||g||^2, 1, -2*g, 0...]; padded rows -> [BIG, 0, ...]
    a = jnp.concatenate(
        [gt_sq, jnp.ones_like(gt_sq), -2.0 * gt32,
         jnp.zeros((B, N, k - C - 2), jnp.float32)], axis=-1)    # (B, N, K)
    if n_pad > N:
        pad_rows = jnp.zeros((B, n_pad - N, k), jnp.float32).at[..., 0].set(_BIG)
        a = jnp.concatenate([a, pad_rows], axis=1)               # (B, N_pad, K)

    # Bm[b, :, m] = [1, ||c||^2, c, 0...]^T; padded cols -> [0, BIG, 0, ...]^T
    bm = jnp.concatenate(
        [jnp.ones_like(co_sq), co_sq, coord32,
         jnp.zeros((B, M, k - C - 2), jnp.float32)], axis=-1)    # (B, M, K)
    bm = jnp.swapaxes(bm, 1, 2)                                  # (B, K, M) channels-first / lane-dense
    if m_pad > M:
        pad_cols = jnp.zeros((B, k, m_pad - M), jnp.float32).at[:, 1, :].set(_BIG)
        bm = jnp.concatenate([bm, pad_cols], axis=2)             # (B, K, M_pad)

    kernel = functools.partial(
        _chamfer_kernel, tn=tn, n_real=N, inv_n=1.0 / N,
        mask_rows=(n_pad != N))

    out_gt, out_col = pl.pallas_call(
        kernel,
        out_shape=(
            jax.ShapeDtypeStruct((B, 1, 128), jnp.float32),       # per-batch sum_gt / N
            jax.ShapeDtypeStruct((B, ni, 1, m_pad), jnp.float32),  # per-tile col mins
        ),
        grid_spec=pltpu.PrefetchScalarGridSpec(
            num_scalar_prefetch=0,
            grid=(B, ni, nj),
            in_specs=[
                pl.BlockSpec((None, tn, k), lambda b, i, j: (b, i, 0)),   # gt-side operand
                pl.BlockSpec((None, k, tm), lambda b, i, j: (b, 0, j)),   # coord-side operand
            ],
            out_specs=[
                pl.BlockSpec((None, 1, 128), lambda b, i, j: (b, 0, 0)),
                pl.BlockSpec((None, None, 1, tm), lambda b, i, j: (b, i, 0, j)),
            ],
            scratch_shapes=[
                pltpu.VMEM((tn, 1), jnp.float32),   # running row-min for current N tile
                pltpu.VMEM((1, 1), jnp.float32),    # per-batch partial accumulator
            ],
        ),
        compiler_params=pltpu.CompilerParams(
            dimension_semantics=("parallel", "arbitrary", "arbitrary")),
    )(a, bm)

    # Final reductions in the wrapper (cheap): min over gt tiles, drop padded
    # coord columns, take means, apply the loss weight.
    match_coord = jnp.min(out_col[:, :, 0, :M], axis=1)   # (B, M)
    mean_gt = jnp.mean(out_gt[:, 0, 0])                   # == match_gt.mean()
    return weight * (mean_gt + jnp.mean(match_coord))


if __name__ == "__main__":
    key = jax.random.PRNGKey(0)
    k1, k2 = jax.random.split(key)

    # Small shapes consistent with the module: point clouds, channels-last.
    B, M, N, C = 2, 48, 64, 3
    coord = jax.random.normal(k1, (B, M, C), dtype=jnp.float32)
    gt = jax.random.normal(k2, (B, N, C), dtype=jnp.float32)

    weight = 0.5
    threshold = 1.2  # stored by the module, unused in forward

    out = chamfer_lossv2(coord, gt, weight=weight, threshold=threshold)
    out = jax.block_until_ready(out)

    # Pure-JAX reference of the PyTorch forward (exact broadcast form).
    diff = gt[:, :, None, :] - coord[:, None, :, :]        # (B, N, M, C)
    dis = jnp.sum(diff * diff, axis=-1)                    # (B, N, M)
    match_gt = jnp.min(dis, axis=-1)                       # (B, N)
    match_coord = jnp.min(dis, axis=-2)                    # (B, M)
    ref = weight * (match_coord.mean() + match_gt.mean())

    # The MXU path uses the ||g||^2 + ||c||^2 - 2 g.c decomposition, so allow
    # a slightly looser tolerance than the exact (g - c)^2 form.
    assert jnp.allclose(out, ref, rtol=1e-4, atol=1e-4), (out, ref)
    print("KERNEL_OK")
</pallas_src>

<mosaic_0001>
module attributes {stable_mosaic.version = 11 : i64} {
  func.func @_chamfer_kernel(%arg0: i32, %arg1: i32, %arg2: i32, %arg3: memref<1x64x8xf32, #tpu.memory_space<vmem>>, %arg4: memref<1x8x128xf32, #tpu.memory_space<vmem>>, %arg5: memref<1x1x128xf32, #tpu.memory_space<vmem>>, %arg6: memref<1x1x1x128xf32, #tpu.memory_space<vmem>>, %arg7: memref<64x1xf32, #tpu.memory_space<vmem>>, %arg8: memref<1x1xf32, #tpu.memory_space<vmem>>) attributes {dimension_semantics = [#tpu.dimension_semantics<parallel>, #tpu.dimension_semantics<arbitrary>, #tpu.dimension_semantics<arbitrary>], iteration_bounds = array<i64: 2, 1, 1>, scalar_prefetch = 0 : i64, scratch_operands = 2 : i64, tpu.core_type = #tpu.core_type<tc>, window_params = [{transform_indices = @transform_0, window_bounds = array<i64: 1, 64, 8>}, {transform_indices = @transform_1, window_bounds = array<i64: 1, 8, 128>}, {transform_indices = @transform_2, window_bounds = array<i64: 1, 1, 128>}, {transform_indices = @transform_3, window_bounds = array<i64: 1, 1, 1, 128>}]} {
    %c0_i32 = arith.constant 0 : i32
    %0 = arith.cmpi eq, %arg1, %c0_i32 : i32
    %c0_i32_0 = arith.constant 0 : i32
    %1 = arith.cmpi eq, %arg2, %c0_i32_0 : i32
    %2 = arith.andi %0, %1 : i1
    %3 = arith.extui %2 : i1 to i32
    %c0_i32_1 = arith.constant 0 : i32
    %4 = arith.cmpi ne, %3, %c0_i32_1 : i32
    scf.if %4 {
      %cst_24 = arith.constant 0.000000e+00 : f32
      %31 = vector.broadcast %cst_24 : f32 to vector<1x1xf32>
      %c0_25 = arith.constant 0 : index
      %c0_26 = arith.constant 0 : index
      %32 = vector.load %arg8[%c0_25, %c0_26] : memref<1x1xf32, #tpu.memory_space<vmem>>, vector<1x1xf32>
      tpu.vector_store %arg8[%c0_25, %c0_26], %31 {strides = array<i32>} : memref<1x1xf32, #tpu.memory_space<vmem>>, vector<1x1xf32>,
    } else {
    }
    %c0_i32_2 = arith.constant 0 : i32
    %5 = arith.cmpi eq, %arg2, %c0_i32_2 : i32
    %6 = arith.extui %5 : i1 to i32
    %c0_i32_3 = arith.constant 0 : i32
    %7 = arith.cmpi ne, %6, %c0_i32_3 : i32
    scf.if %7 {
      %cst_24 = arith.constant 0x7F800000 : f32
      %31 = vector.broadcast %cst_24 : f32 to vector<64x1xf32>
      %c0_25 = arith.constant 0 : index
      %c0_26 = arith.constant 0 : index
      %32 = vector.load %arg7[%c0_25, %c0_26] : memref<64x1xf32, #tpu.memory_space<vmem>>, vector<64x1xf32>
      tpu.vector_store %arg7[%c0_25, %c0_26], %31 {strides = array<i32>} : memref<64x1xf32, #tpu.memory_space<vmem>>, vector<64x1xf32>,
    } else {
    }
    %c0 = arith.constant 0 : index
    %c0_4 = arith.constant 0 : index
    %c0_5 = arith.constant 0 : index
    %8 = vector.load %arg3[%c0, %c0_4, %c0_5] : memref<1x64x8xf32, #tpu.memory_space<vmem>>, vector<1x64x8xf32>
    %9 = vector.shape_cast %8 : vector<1x64x8xf32> to vector<64x8xf32>
    %c0_6 = arith.constant 0 : index
    %c0_7 = arith.constant 0 : index
    %c0_8 = arith.constant 0 : index
    %10 = vector.load %arg4[%c0_6, %c0_7, %c0_8] : memref<1x8x128xf32, #tpu.memory_space<vmem>>, vector<1x8x128xf32>
    %11 = vector.shape_cast %10 : vector<1x8x128xf32> to vector<8x128xf32>
    %cst = arith.constant dense<0.000000e+00> : vector<64x128xf32>
    %12 = tpu.matmul %9, %11, %cst {dimension_numbers = #tpu.dot_dimension_numbers<[1], [0], [0], [1], [0, 0, 1, 1], [], []>} : vector<64x8xf32>, vector<8x128xf32>, vector<64x128xf32> -> vector<64x128xf32>
    %c0_9 = arith.constant 0 : index
    %c0_10 = arith.constant 0 : index
    %13 = vector.load %arg7[%c0_9, %c0_10] : memref<64x1xf32, #tpu.memory_space<vmem>>, vector<64x1xf32>
    %cst_11 = arith.constant dense<0x7F800000> : vector<64xf32>
    %14 = vector.multi_reduction <minimumf>, %12, %cst_11 [1] : vector<64x128xf32> to vector<64xf32>
    %15 = vector.shape_cast %14 : vector<64xf32> to vector<64x1xf32>
    %16 = arith.minimumf %13, %15 : vector<64x1xf32>
    %c0_12 = arith.constant 0 : index
    %c0_13 = arith.constant 0 : index
    %17 = vector.load %arg7[%c0_12, %c0_13] : memref<64x1xf32, #tpu.memory_space<vmem>>, vector<64x1xf32>
    tpu.vector_store %arg7[%c0_12, %c0_13], %16 {strides = array<i32>} : memref<64x1xf32, #tpu.memory_space<vmem>>, vector<64x1xf32>,
    %cst_14 = arith.constant dense<0x7F800000> : vector<128xf32>
    %18 = vector.multi_reduction <minimumf>, %12, %cst_14 [0] : vector<64x128xf32> to vector<128xf32>
    %19 = vector.shape_cast %18 : vector<128xf32> to vector<1x128xf32>
    %c0_15 = arith.constant 0 : index
    %c0_16 = arith.constant 0 : index
    %c0_17 = arith.constant 0 : index
    %c0_18 = arith.constant 0 : index
    %20 = vector.load %arg6[%c0_15, %c0_16, %c0_17, %c0_18] : memref<1x1x1x128xf32, #tpu.memory_space<vmem>>, vector<1x1x1x128xf32>
    %21 = vector.shape_cast %20 : vector<1x1x1x128xf32> to vector<1x128xf32>
    %22 = vector.shape_cast %19 : vector<1x128xf32> to vector<1x1x1x128xf32>
    tpu.vector_store %arg6[%c0_15, %c0_16, %c0_17, %c0_18], %22 {strides = array<i32>} : memref<1x1x1x128xf32, #tpu.memory_space<vmem>>, vector<1x1x1x128xf32>,
    %c0_i32_19 = arith.constant 0 : i32
    %23 = arith.cmpi eq, %arg2, %c0_i32_19 : i32
    %24 = arith.extui %23 : i1 to i32
    %c0_i32_20 = arith.constant 0 : i32
    %25 = arith.cmpi ne, %24, %c0_i32_20 : i32
    scf.if %25 {
      %c0_24 = arith.constant 0 : index
      %c0_25 = arith.constant 0 : index
      %31 = vector.load %arg7[%c0_24, %c0_25] : memref<64x1xf32, #tpu.memory_space<vmem>>, vector<64x1xf32>
      %c0_26 = arith.constant 0 : index
      %c0_27 = arith.constant 0 : index
      %32 = vector.load %arg8[%c0_26, %c0_27] : memref<1x1xf32, #tpu.memory_space<vmem>>, vector<1x1xf32>
      %33 = vector.shape_cast %31 : vector<64x1xf32> to vector<1x64x1xf32>
      %cst_28 = arith.constant dense<0.000000e+00> : vector<1xf32>
      %34 = vector.multi_reduction <add>, %33, %cst_28 [1, 2] : vector<1x64x1xf32> to vector<1xf32>
      %35 = vector.shape_cast %34 : vector<1xf32> to vector<1x1x1xf32>
      %36 = vector.extract %35[0, 0, 0] : f32 from vector<1x1x1xf32>
      %cst_29 = arith.constant 1.562500e-02 : f32
      %37 = arith.mulf %36, %cst_29 : f32
      %38 = vector.broadcast %37 : f32 to vector<1x1xf32>
      %39 = arith.addf %32, %38 : vector<1x1xf32>
      %c0_30 = arith.constant 0 : index
      %c0_31 = arith.constant 0 : index
      %40 = vector.load %arg8[%c0_30, %c0_31] : memref<1x1xf32, #tpu.memory_space<vmem>>, vector<1x1xf32>
      tpu.vector_store %arg8[%c0_30, %c0_31], %39 {strides = array<i32>} : memref<1x1xf32, #tpu.memory_space<vmem>>, vector<1x1xf32>,
    } else {
    }
    %c0_i32_21 = arith.constant 0 : i32
    %26 = arith.cmpi eq, %arg1, %c0_i32_21 : i32
    %c0_i32_22 = arith.constant 0 : i32
    %27 = arith.cmpi eq, %arg2, %c0_i32_22 : i32
    %28 = arith.andi %26, %27 : i1
    %29 = arith.extui %28 : i1 to i32
    %c0_i32_23 = arith.constant 0 : i32
    %30 = arith.cmpi ne, %29, %c0_i32_23 : i32
    scf.if %30 {
      %c0_24 = arith.constant 0 : index
      %c0_25 = arith.constant 0 : index
      %31 = vector.load %arg8[%c0_24, %c0_25] : memref<1x1xf32, #tpu.memory_space<vmem>>, vector<1x1xf32>
      %32 = vector.shape_cast %31 : vector<1x1xf32> to vector<1x1xf32>
      %33 = vector.broadcast %32 : vector<1x1xf32> to vector<1x128xf32>
      %c0_26 = arith.constant 0 : index
      %c0_27 = arith.constant 0 : index
      %c0_28 = arith.constant 0 : index
      %34 = vector.load %arg5[%c0_26, %c0_27, %c0_28] : memref<1x1x128xf32, #tpu.memory_space<vmem>>, vector<1x1x128xf32>
      %35 = vector.shape_cast %34 : vector<1x1x128xf32> to vector<1x128xf32>
      %36 = vector.shape_cast %33 : vector<1x128xf32> to vector<1x1x128xf32>
      tpu.vector_store %arg5[%c0_26, %c0_27, %c0_28], %36 {strides = array<i32>} : memref<1x1x128xf32, #tpu.memory_space<vmem>>, vector<1x1x128xf32>,
    } else {
    }
    return
  }
  func.func @transform_0(%arg0: i32, %arg1: i32, %arg2: i32) -> (i32, i32, i32) {
    %c0_i32 = arith.constant 0 : i32
    %c0_i32_0 = arith.constant 0 : i32
    return %arg0, %arg1, %c0_i32 : i32, i32, i32
  }
  func.func @transform_1(%arg0: i32, %arg1: i32, %arg2: i32) -> (i32, i32, i32) {
    %c0_i32 = arith.constant 0 : i32
    %c0_i32_0 = arith.constant 0 : i32
    return %arg0, %c0_i32, %arg2 : i32, i32, i32
  }
  func.func @transform_2(%arg0: i32, %arg1: i32, %arg2: i32) -> (i32, i32, i32) {
    %c0_i32 = arith.constant 0 : i32
    %c0_i32_0 = arith.constant 0 : i32
    %c0_i32_1 = arith.constant 0 : i32
    return %arg0, %c0_i32, %c0_i32_0 : i32, i32, i32
  }
  func.func @transform_3(%arg0: i32, %arg1: i32, %arg2: i32) -> (i32, i32, i32, i32) {
    %c0_i32 = arith.constant 0 : i32
    %c0_i32_0 = arith.constant 0 : i32
    return %arg0, %arg1, %c0_i32, %arg2 : i32, i32, i32, i32
  }
}

</mosaic_0001>

<bundles_post_ra>
// kernel: tpu_custom_call.1
= control target key start
LH: loop header
LB: loop body
LE: loop exit
PB: predicated region body
PF: predicated region fallthrough
CT: control target
= control target key end

     0   :  { %9 = vsyncpa [#allocation5], 0  ;;  %s1097_s0 = inlined_call_operand.vmem [shape: f32[2,64,8], index: 0, kind: input, shape index: {}]   ;;  %s1098_s1 = inlined_call_operand.vmem [shape: f32[2,8,128], index: 1, kind: input, shape index: {}]   ;;  %s1099_s2 = inlined_call_operand.hbm [shape: f32[2,1,128], index: 2, kind: output, shape index: {0}]   ;;  %s1100_s3 = inlined_call_operand.hbm [shape: f32[2,1,1,128], index: 3, kind: output, shape index: {1}]  }
   0x1   :  { %11 = vsyncpa [#allocation5 + $0x1], 0 }
   0x2   :  { %12 = vsyncpa [#allocation7], 0 }
   0x3   :  { %14 = vsyncpa [#allocation7 + $0x1], 0  ;;  %s912_s12 = smov 0   ;;  %s914_s13 = smov 0  }
   0x4   :  { %s916_s14 = smov 0   ;;  %s918_s15 = smov 0  }
   0x5   :  { %s920_s16 = smov 0   ;;  %s922_s17 = smov 0  }
   0x6 LB: > { %s662_s18 = sadd.s32 4294967295, %s885_s17   ;;  %s663_s19 = sadd.s32 4294967294, %s885_s17   ;;  %s885_s17 = sphi %s922_s17, %s20_s17   ;;  %s881_s16 = sphi %s920_s16, %s1107_s16   ;;  %s877_s15 = sphi %s918_s15, %s1106_s15   ;;  %s873_s14 = sphi %s916_s14, %s1105_s14   ;;  %s869_s13 = sphi %s914_s13, %s1104_s13   ;;  %s865_s12 = sphi %s912_s12, %s1103_s12  }
   0x7   : > { %s39_s20 = sadd.s32 1, %s881_s16  ;;  %s102_s21 = sadd.s32 1, %s873_s14 }
   0x8   : > { %p41_p0 = scmp.ge.s32.totalorder %s39_s20, 2  ;;  %p112_p1 = scmp.ne.s32.totalorder %s873_s14, %s869_s13 }
   0x9   : > { %p113_p2 = scmp.eq.s32.totalorder %s662_s18, 1  ;;  %p118_p3 = scmp.ne.s32.totalorder %s869_s13, %s865_s12 }
   0xa   : > { %s1109_s20 = smov (%p41_p0, %s39_s20), 0  ;;  %p119_p5 = scmp.eq.s32.totalorder %s663_s19, 1 }
   0xb   : > { %p952_p4 = por %p113_p2, %p112_p1  ;;  %s99_s23 = ssub.s32 %s881_s16, %s1109_s20 }
   0xc   : > { %p666_p6 = scmp.ge.s32.totalorder %s885_s17, 1  ;;  %p100_p7 = scmp.eq.s32.totalorder %s99_s23, 0 }
   0xd   : > { %p959_p8 = por %p119_p5, %p118_p3  ;;  %p190_p9 = scmp.lt.s32.totalorder %s885_s17, 3 }
   0xe   : > { %s965_s25 = scalar_select %p100_p7, %s873_s14, %s102_s21  }
   0xf   : > { %p191_p10 = pnand %p666_p6, %p190_p9 }
  0x10   : > { %p229_p11 = scmp.lt.s32.totalorder (!%p191_p10), %s877_s15, 1  ;;  %vm274_vm0 = vcmask (!%p191_p10), 64512   ;;  %vm256_vm1 = vcmask (!%p191_p10), 7168   ;;  %v887_v9 = vmov (!%p191_p10), inf   ;;  %s992_s8 = sand.u32 (!%p191_p10), 1, %s869_s13   ;;  %vm251_vm2 = vcmask (!%p191_p10), 0  }
  0x11   : > { %194 = sbr.rel (%p191_p10) target bundleno = 777 (0x309), region = 28  ;;  %257 = vst.msk [vmem:[#allocation2] sm:$0xff] (!%p191_p10), %vm256_vm1, %v887_v9  ;;  %258 = vst.msk [vmem:[#allocation2 + $0x8] sm:$0xff] (!%p191_p10), %vm256_vm1, %v887_v9  ;;  %s227_s9 = scalar_lea.vmem (!%p191_p10), [#allocation6], %s992_s8 }
  0x12   : > { %259 = vst.msk [vmem:[#allocation2 + $0x10] sm:$0xff] (!%p191_p10), %vm256_vm1, %v887_v9  ;;  %260 = vst.msk [vmem:[#allocation2 + $0x18] sm:$0xff] (!%p191_p10), %vm256_vm1, %v887_v9  ;;  %s678_s18 = sshll.u32 (!%p191_p10), %s877_s15, 4  ;;  %s890_s29 = smov (!%p191_p10), [#allocation6]  }
  0x13   : > { %261 = vst.msk [vmem:[#allocation2 + $0x20] sm:$0xff] (!%p191_p10), %vm256_vm1, %v887_v9  ;;  %262 = vst.msk [vmem:[#allocation2 + $0x28] sm:$0xff] (!%p191_p10), %vm256_vm1, %v887_v9  ;;  %s1021_s23 = scalar_lea.hbm (!%p191_p10), %s1100_s3, %s678_s18  ;;  %s779_s30 = sshll.u32 (!%p191_p10), %s890_s29, 4  ;;  %s780_s30 = int_to_ptr.vmem [resolvable:$false] %s779_s30 }
  0x14   : > { %263 = vst.msk [vmem:[#allocation2 + $0x30] sm:$0xff] (!%p191_p10), %vm256_vm1, %v887_v9  ;;  %264 = vst.msk [vmem:[#allocation2 + $0x38] sm:$0xff] (!%p191_p10), %vm256_vm1, %v887_v9 }
  0x18   : > { %s230_s26 = scalar_select %p229_p11, %s877_s15, 1  ;;  %v404_v31 = vld [vmem:[#allocation2] sm:$0xff]  ;;  %v405_v34 = vld [vmem:[#allocation2 + $0x8] sm:$0xff] }
  0x19   : > { %v406_v35 = vld [vmem:[#allocation2 + $0x10] sm:$0xff]  ;;  %v407_v40 = vld [vmem:[#allocation2 + $0x18] sm:$0xff] }
  0x1a   : > { %s682_s27 = sshll.u32 %s230_s26, 6  ;;  %s669_s28 = sshll.u32 %s230_s26, 3  ;;  %v408_v41 = vld [vmem:[#allocation2 + $0x20] sm:$0xff]  ;;  %v409_v46 = vld [vmem:[#allocation2 + $0x28] sm:$0xff] }
  0x1b   : > { %s236_s4 = scalar_lea.vmem %s1097_s0, %s682_s27  ;;  %s244_s7 = scalar_lea.vmem %s1098_s1, %s669_s28  ;;  %v410_v47 = vld [vmem:[#allocation2 + $0x30] sm:$0xff]  ;;  %v411_v53 = vld [vmem:[#allocation2 + $0x38] sm:$0xff] }
  0x1c   : > { %v273_v0 = vld [vmem:[%s244_s7] sm:$0xff]  ;;  %v266_v3 = vld [vmem:[%s236_s4 + $0x8] sm:$0xff]  ;;  %v267_v5 = vld [vmem:[%s236_s4 + $0x10] sm:$0xff]  ;;  %s545_s26 = sshll.u32 %s227_s9, 4  ;;  %s518_s27 = scalar_lea.sflag [#allocation7], %s992_s8  ;;  %s546_s26 = int_to_ptr.vmem [resolvable:$true] %s545_s26 }
  0x1d   : > { %v265_v1 = vld [vmem:[%s236_s4] sm:$0xff]  ;;  %692 = vmatprep.subr.mxu0 %v273_v0  ;;  %706 = vmatprep.subr.mxu1 %v273_v0  ;;  %v270_v4 = vld [vmem:[%s236_s4 + $0x28] sm:$0xff]  ;;  %v271_v6 = vld [vmem:[%s236_s4 + $0x30] sm:$0xff]  ;;  %s775_s28 = scalar_lea.vmem %s546_s26, 16  ;;  %p782_p1 = scmp.lt.s32.totalorder %s546_s26, %s780_s30 }
  0x1e   : > { %v269_v2 = vld [vmem:[%s236_s4 + $0x20] sm:$0xff]  ;;  %693 = vmatpush3.msra.mxu0 %v273_v0  ;;  %707 = vmatpush3.msra.mxu1 %v273_v0  ;;  %v268_v7 = vld [vmem:[%s236_s4 + $0x18] sm:$0xff]  ;;  %p776_p12 = scmp.ne.s32.totalorder %s546_s26, %s775_s28 }
  0x1f   : > { %694 = vmatprep.mubr.msk.f32.mxu0 %vm274_vm0, %v265_v1  ;;  %700 = vmatprep.mubr.msk.f32.mxu1 %vm274_vm0, %v269_v2  ;;  %v272_v8 = vld [vmem:[%s236_s4 + $0x38] sm:$0xff]  ;;  %s781_s4 = scalar_lea.vmem %s780_s30, 32 }
  0x20   : > { %695 = vmatmul.mubr.msk.f32.vlgmr.msra.gmra.mrb[0].mxu0 %vm274_vm0, %v266_v3  ;;  %701 = vmatmul.mubr.msk.f32.vlgmr.msra.gmra.mrb[0].mxu1 %vm274_vm0, %v270_v4  ;;  %p777_p13 = pnand %p776_p12, %p952_p4  ;;  %p783_p2 = scmp.lt.s32.totalorder %s781_s4, %s775_s28 }
  0x21   : > { %697 = vmatprep.mubr.msk.f32.mxu0 %vm274_vm0, %v267_v5  ;;  %703 = vmatprep.mubr.msk.f32.mxu1 %vm274_vm0, %v271_v6 }
  0x22   : > { %p778_p0 = pneg %p777_p13  ;;  %p784_p3 = por %p783_p2, %p782_p1 }
  0x24   : > { %698 = vmatmul.mubr.msk.f32.gmra.mrb[2].mxu0 %vm274_vm0, %v268_v7  ;;  %704 = vmatmul.mubr.msk.f32.gmra.mrb[2].mxu1 %vm274_vm0, %v272_v8  ;;  %p785_p5 = pnand %p784_p3, %p778_p0 }
  0xf3   : > { %v696_v10 = vpop.f32.mrb[0].mxu0  ;;  %v702_v11 = vpop.f32.mrb[0].mxu1 }
  0xf4   : > { %v446_v12 = vmin.f32 %v696_v10, %v702_v11  ;;  %v365_v13 = vpop.f32.mrb[1].mxu0  ;;  %v385_v14 = vpop.f32.mrb[1].mxu1 }
  0xf5   : > { %v445_v15 = vmin.f32 %v365_v13, %v385_v14  ;;  %412 = vmin.xlane.f32.xlu0 %v365_v13 }
  0xf7   : > { %v449_v16 = vmin.f32 %v445_v15, %v446_v12  ;;  %v699_v17 = vpop.f32.mrb[2].mxu0  ;;  %v705_v18 = vpop.f32.mrb[2].mxu1  ;;  %v889_v15 = vmov 0  }
  0xf8   : > { %v448_v19 = vmin.f32 %v699_v17, %v705_v18  ;;  %v375_v20 = vpop.f32.mrb[3].mxu0  ;;  %v395_v21 = vpop.f32.mrb[3].mxu1  ;;  %773 = vset.pattern.permute.xlu1 %v889_v15  ;;  %774 = vset.pattern.permute.xlu0 %v889_v15 }
  0xf9   : > { %v447_v22 = vmin.f32 %v375_v20, %v395_v21  ;;  %414 = vmin.xlane.f32.xlu0 %v696_v10  ;;  %416 = vmin.xlane.f32.xlu1 %v375_v20 }
  0xfb   : > { %v450_v23 = vmin.f32 %v447_v22, %v448_v19 }
  0xfd   : > { %v451_v24 = vmin.f32 %v449_v16, %v450_v23  ;;  %418 = vmin.xlane.f32.xlu1 %v699_v17  ;;  %420 = vmin.xlane.f32.xlu0 %v385_v14  ;;  %v888_v14 = vmov 0.0  }
  0xfe   : > { %252 = vst.msk [vmem:[#allocation3] sm:$0x1] %vm251_vm2, %v888_v14 }
  0xff   : > { %v452_v25 = vrot.slane %v451_v24, 4 }
 0x101   : > { %v453_v26 = vmin.f32 %v451_v24, %v452_v25  ;;  %422 = vmin.xlane.f32.xlu1 %v702_v11  ;;  %424 = vmin.xlane.f32.xlu0 %v395_v21 }
 0x103   : > { %v454_v27 = vrot.slane %v453_v26, 2 }
 0x105   : > { %426 = vmin.xlane.f32.xlu1 %v705_v18  ;;  %v455_v28 = vmin.f32 %v453_v26, %v454_v27  ;;  %v470_v23 = vld [vmem:[#allocation3] sm:$0x1] }
 0x107   : > { %v456_v29 = vrot.slane %v455_v28, 1 }
 0x109   : > { %v457_v30 = vmin.f32 %v455_v28, %v456_v29 }
 0x10b   : > { %458 = vst [vmem:[%s227_s9] sm:$0x1] %v457_v30 }
 0x182   : > { %v413_v32 = vpop.xlane.xlu0 %412 }
 0x183   : > { %v428_v33 = vmin.f32 %v404_v31, %v413_v32 }
 0x185   : > { %437 = vst.msk [vmem:[#allocation2] sm:$0xff] %vm256_vm1, %v428_v33 }
 0x186   : > { %v415_v36 = vpop.xlane.xlu0 %414  ;;  %v417_v37 = vpop.xlane.xlu1 %416 }
 0x187   : > { %v429_v38 = vmin.f32 %v405_v34, %v415_v36  ;;  %v430_v39 = vmin.f32 %v406_v35, %v417_v37 }
 0x189   : > { %438 = vst.msk [vmem:[#allocation2 + $0x8] sm:$0xff] %vm256_vm1, %v429_v38  ;;  %439 = vst.msk [vmem:[#allocation2 + $0x10] sm:$0xff] %vm256_vm1, %v430_v39 }
 0x18a   : > { %v419_v42 = vpop.xlane.xlu1 %418  ;;  %v421_v43 = vpop.xlane.xlu0 %420 }
 0x18b   : > { %v431_v44 = vmin.f32 %v407_v40, %v419_v42  ;;  %v432_v45 = vmin.f32 %v408_v41, %v421_v43 }
 0x18c   : > { %v462_v50 = vld [vmem:[#allocation2] sm:$0xff] }
 0x18d   : > { %440 = vst.msk [vmem:[#allocation2 + $0x18] sm:$0xff] %vm256_vm1, %v431_v44  ;;  %441 = vst.msk [vmem:[#allocation2 + $0x20] sm:$0xff] %vm256_vm1, %v432_v45  ;;  %v471_v56 = vsel %vm256_vm1, %v462_v50, 0.0 }
 0x18e   : > { %v423_v48 = vpop.xlane.xlu1 %422  ;;  %v425_v49 = vpop.xlane.xlu0 %424 }
 0x18f   : > { %v433_v51 = vmin.f32 %v409_v46, %v423_v48  ;;  %v434_v52 = vmin.f32 %v410_v47, %v425_v49 }
 0x190   : > { %v463_v54 = vld [vmem:[#allocation2 + $0x8] sm:$0xff]  ;;  %v464_v55 = vld [vmem:[#allocation2 + $0x10] sm:$0xff] }
 0x191   : > { %442 = vst.msk [vmem:[#allocation2 + $0x28] sm:$0xff] %vm256_vm1, %v433_v51  ;;  %443 = vst.msk [vmem:[#allocation2 + $0x30] sm:$0xff] %vm256_vm1, %v434_v52  ;;  %v472_v57 = vsel %vm256_vm1, %v463_v54, 0.0  ;;  %v474_v61 = vsel %vm256_vm1, %v464_v55, 0.0 }
 0x192   : > { %v427_v58 = vpop.xlane.xlu1 %426  ;;  %v473_v59 = vadd.f32 %v472_v57, %v471_v56 }
 0x193   : > { %v435_v60 = vmin.f32 %v411_v53, %v427_v58 }
 0x194   : > { %v465_v62 = vld [vmem:[#allocation2 + $0x18] sm:$0xff]  ;;  %v466_v63 = vld [vmem:[#allocation2 + $0x20] sm:$0xff]  ;;  %v475_v0 = vadd.f32 %v474_v61, %v473_v59 }
 0x195   : > { %444 = vst.msk [vmem:[#allocation2 + $0x38] sm:$0xff] %vm256_vm1, %v435_v60  ;;  %v476_v1 = vsel %vm256_vm1, %v465_v62, 0.0  ;;  %v478_v2 = vsel %vm256_vm1, %v466_v63, 0.0 }
 0x196   : > { %v477_v3 = vadd.f32 %v476_v1, %v475_v0 }
 0x198   : > { %v467_v4 = vld [vmem:[#allocation2 + $0x28] sm:$0xff]  ;;  %v468_v5 = vld [vmem:[#allocation2 + $0x30] sm:$0xff]  ;;  %v479_v6 = vadd.f32 %v478_v2, %v477_v3 }
 0x199   : > { %v480_v7 = vsel %vm256_vm1, %v467_v4, 0.0  ;;  %v482_v8 = vsel %vm256_vm1, %v468_v5, 0.0 }
 0x19a   : > { %v481_v9 = vadd.f32 %v480_v7, %v479_v6 }
 0x19c   : > { %v469_v10 = vld [vmem:[#allocation2 + $0x38] sm:$0xff]  ;;  %v483_v11 = vadd.f32 %v482_v8, %v481_v9 }
 0x19d   : > { %v484_v12 = vsel %vm256_vm1, %v469_v10, 0.0 }
 0x19e   : > { %v485_v13 = vadd.f32 %v484_v12, %v483_v11 }
 0x1a0   : > { %486 = vadd.xlane.f32.xlu0 %v485_v13 }
 0x22d   : > { %v487_v16 = vpop.xlane.xlu0 %486 }
 0x22e   : > { %v488_v17 = vrot.slane %v487_v16, 4 }
 0x230   : > { %v489_v18 = vadd.f32 %v488_v17, %v487_v16 }
 0x232   : > { %v490_v19 = vrot.slane %v489_v18, 2 }
 0x234   : > { %v491_v20 = vadd.f32 %v490_v19, %v489_v18 }
 0x236   : > { %v492_v21 = vrot.slane %v491_v20, 1 }
 0x238   : > { %v493_v22 = vadd.f32 %v492_v21, %v491_v20 }
 0x23a   : > { %708 = vpush %v493_v22 }
 0x26b   : > { %s709_s10 = spop %708 }
 0x26c   : > { %s495_s11 = smul.f32 0.015625, %s709_s10 }
 0x26e   : > { %v496_v24 = vstv %s495_s11 }
 0x26f   : > { %v497_v25 = vadd.f32 %v496_v24, %v470_v23 }
 0x271   : > { %499 = vst.msk [vmem:[#allocation3] sm:$0x1] %vm251_vm2, %v497_v25 }
 0x278   : > { %v502_v26 = vld [vmem:[#allocation3] sm:$0x1] }
 0x279   : > { %505 = vperm.xlu1 %773, %v502_v26  }
 0x27a   : > { %788 = shalt.err (!%p785_p5)
}
 0x27b   : > { %s789_s5 = scalar_lea.hbm %s1021_s23, 16  ;;  %s793_s9 = scalar_lea.hbm %s1100_s3, 32 }
 0x27c   : > { %p790_p6 = scmp.ne.s32.totalorder %s1021_s23, %s789_s5  ;;  %p794_p10 = scmp.lt.u32.totalorder %s1021_s23, %s1100_s3 }
 0x27d   : > { %p795_p11 = scmp.lt.u32.totalorder %s793_s9, %s789_s5  ;;  %p797_p13 = scmp.lt.u32.totalorder %s789_s5, %s1021_s23 }
 0x27e   : > { %p791_p7 = pnand %p790_p6, %p952_p4 }
 0x27f   : > { %p796_p12 = por %p795_p11, %p794_p10 }
 0x280   : > { %p792_p9 = pneg %p791_p7 }
 0x281   : > { %p798_p0 = por %p797_p13, %p796_p12 }
 0x283   : > { %p799_p1 = pnand %p798_p0, %p792_p9 }
 0x285   : > { %802 = shalt.err (!%p799_p1)
}
 0x286   : > { %711 = dma.vmem_to_hbm [thread:$0]  (%p952_p4), %s546_s26, 16, %s1021_s23, %s518_s27   ;;  %v508_v27 = vlaneseq }
 0x287   : > { %s221_s19 = scalar_lea.vmem [#allocation4], %s992_s8  ;;  %s1049_s30 = scalar_lea.hbm %s1099_s2, %s678_s18 }
 0x288   : > { %v509_v28 = vshrl.u32 %v508_v27, 7  ;;  %s530_s21 = sshll.u32 %s221_s19, 4  ;;  %s514_s23 = scalar_lea.sflag [#allocation5], %s992_s8  ;;  %s1051_s21 = int_to_ptr.vmem [resolvable:$true] %s530_s21 }
 0x289   : > { %s803_s26 = scalar_lea.vmem %s1051_s21, 16  ;;  %s891_s27 = smov [#allocation4]  }
 0x28a   : > { %v510_v29 = vsub.s32 0, %v509_v28  ;;  %p804_p2 = scmp.ne.s32.totalorder %s1051_s21, %s803_s26  ;;  %s807_s4 = sshll.u32 %s891_s27, 4  ;;  %s808_s4 = int_to_ptr.vmem [resolvable:$false] %s807_s4 }
 0x28b   : > { %s809_s15 = scalar_lea.vmem %s808_s4, 32  ;;  %p810_p6 = scmp.lt.s32.totalorder %s1051_s21, %s808_s4 }
 0x28c   : > { %p805_p3 = pnand %p804_p2, %p952_p4  ;;  %p811_p7 = scmp.lt.s32.totalorder %s809_s15, %s803_s26 }
 0x28e   : > { %p806_p5 = pneg %p805_p3  ;;  %p812_p9 = por %p811_p7, %p810_p6 }
 0x290   : > { %p813_p10 = pnand %p812_p9, %p806_p5 }
 0x2f8   : > { %v506_v30 = vpop.permute.xlu1 %505 }
 0x2f9   : > { %v511_v31 = vrot.slane %v506_v30, %v510_v29 }
 0x2fb   : > { %512 = vst [vmem:[%s221_s19] sm:$0x1] %v511_v31 }
 0x2fc   : > { %816 = shalt.err (!%p813_p10)
}
 0x2fd   : > { %s817_s8 = scalar_lea.hbm %s1049_s30, 16  ;;  %s821_s6 = scalar_lea.hbm %s1099_s2, 32 }
 0x2fe   : > { %p818_p11 = scmp.ne.s32.totalorder %s1049_s30, %s817_s8  ;;  %p822_p0 = scmp.lt.u32.totalorder %s1049_s30, %s1099_s2 }
 0x2ff   : > { %p823_p1 = scmp.lt.u32.totalorder %s821_s6, %s817_s8  ;;  %p825_p3 = scmp.lt.u32.totalorder %s817_s8, %s1049_s30 }
 0x300   : > { %p819_p12 = pnand %p818_p11, %p952_p4 }
 0x301   : > { %p824_p2 = por %p823_p1, %p822_p0 }
 0x302   : > { %p820_p13 = pneg %p819_p12 }
 0x303   : > { %p826_p5 = por %p825_p3, %p824_p2 }
 0x305   : > { %p827_p6 = pnand %p826_p5, %p820_p13 }
 0x307   : > { %830 = shalt.err (!%p827_p6)
}
 0x308   : > { %710 = dma.vmem_to_hbm [thread:$0]  (%p952_p4), %s1051_s21, 16, %s1049_s30, %s514_s23  }
 0x309 PF: > { %p721_p7 = scmp.ge.s32.totalorder %s885_s17, 2  ;;  %s557_s10 = sand.u32 1, %s865_s12  }
 0x30a   : > { %s558_s11 = scalar_lea.sflag [#allocation5], %s557_s10 }
 0x30b   : > { %p715_p9 = pnand %p721_p7, %p959_p8 }
 0x30d   : > { %856 = dma.done.wait (!%p715_p9), %s558_s11, 16  }
 0x30e   : > { %858 = vsyncadd (!%p715_p9), %s558_s11, 4294967280  ;;  %s566_s19 = scalar_lea.sflag [#allocation7], %s557_s10 }
 0x30f   : > { %860 = dma.done.wait (!%p715_p9), %s566_s19, 16  }
 0x310   : > { %862 = vsyncadd (!%p715_p9), %s566_s19, 4294967280  ;;  %s20_s17 = sadd.s32 1, %s885_s17   ;;  %s1103_s12 = smov %s869_s13 }
 0x311   : > { %p17_p10 = scmp.ge.s32.totalorder %s20_s17, 4   ;;  %s1104_s13 = smov %s873_s14 }
 0x312   : > { %s1105_s14 = smov %s965_s25  ;;  %s1106_s15 = smov %s881_s16 }
 0x313   : > { %s1107_s16 = smov %s1109_s20  ;;  %19 = sbr.rel (!%p17_p10) target bundleno = 6 (0x6), region = 99 }
 0x31a   :  { %570 = vsyncpa [#allocation5], 1 }
 0x31b   :  { %572 = vsyncpa [#allocation5 + $0x1], 1 }
 0x31c   :  { %573 = vsyncpa [#allocation7], 1 }
 0x31d   :  { %575 = vsyncpa [#allocation7 + $0x1], 1 }

</bundles_post_ra>
